<compile_context>
chip_gen: v5e
topology: v5e:2x2
jax: 0.10.0
libtpu: 0.0.40
codegen_flags: <defaults>
</compile_context>

<pallas_src>
import functools
import math

import jax
import jax.numpy as jnp
from jax.experimental import pallas as pl
from jax.experimental.pallas import tpu as pltpu


def _round_up(x, m):
    return ((x + m - 1) // m) * m


def _cdiv(a, b):
    return (a + b - 1) // b


def dueling_dqn_kernel(x_ref, w1_ref, b1_ref, w2_ref, b2_ref, wh_ref, bh_ref,
                       out_ref, *, precision):
    """Fused forward: two ReLU layers + fused (V|A) head.

    wh/bh are the V and A head weights/biases concatenated along the output
    axis, so a single matmul produces [V | A] of width 1 + n_actions.
    """
    x = x_ref[...]

    # fc1 = relu(x @ W1 + b1)
    h1 = jnp.dot(x, w1_ref[...], preferred_element_type=jnp.float32,
                 precision=precision) + b1_ref[...]
    h1 = jnp.maximum(h1, 0.0)

    # fc2 = relu(h1 @ W2 + b2)
    h2 = jnp.dot(h1, w2_ref[...], preferred_element_type=jnp.float32,
                 precision=precision) + b2_ref[...]
    h2 = jnp.maximum(h2, 0.0)

    # Fused heads: one matmul gives [V | A].
    heads = jnp.dot(h2, wh_ref[...], preferred_element_type=jnp.float32,
                    precision=precision) + bh_ref[...]
    out_ref[...] = heads.astype(out_ref.dtype)


# Don't bother splitting the batch across >1 grid block (for the 2 v7x
# TensorCores) unless each block would still have at least this many rows.
_MIN_SPLIT_ROWS = 512


def dueling_dqn_forward(x, params, *, block_b=2048,
                        precision=jax.lax.Precision.HIGHEST):
    """x: [B, D_in] float32.  params: dict of transposed weights / (1, out) biases.

    Returns (V, A) with shapes (B, 1) and (B, n_actions).
    """
    B, d_in = x.shape
    fc1 = params["w1"].shape[1]
    fc2 = params["w2"].shape[1]
    n_actions = params["wa"].shape[1]
    n_heads = 1 + n_actions

    # Fuse V and A heads into one (fc2, 1+n_actions) matmul.
    wh = jnp.concatenate([params["wv"], params["wa"]], axis=1)   # (fc2, 1+nA)
    bh = jnp.concatenate([params["bv"], params["ba"]], axis=1)   # (1,   1+nA)

    # --- batch tiling: choose block count first, then tile size (min padding) ---
    g = max(1, _cdiv(B, block_b))
    if g == 1 and B >= 2 * _MIN_SPLIT_ROWS:
        g = 2                       # make sure both v7x TensorCores get work
    if g > 1 and g % 2:
        g += 1                      # even block count balances the 2 cores
    tb = _round_up(_cdiv(B, g), 8)
    b_pad = g * tb
    if b_pad != B:
        x = jnp.pad(x, ((0, b_pad - B), (0, 0)))

    kernel = functools.partial(dueling_dqn_kernel, precision=precision)

    out = pl.pallas_call(
        kernel,
        out_shape=jax.ShapeDtypeStruct((b_pad, n_heads), jnp.float32),
        grid=(g,),
        in_specs=[
            pl.BlockSpec((tb, d_in), lambda i: (i, 0)),      # batch-tiled activations
            pl.BlockSpec((d_in, fc1), lambda i: (0, 0)),     # weights stay VMEM-resident
            pl.BlockSpec((1, fc1), lambda i: (0, 0)),
            pl.BlockSpec((fc1, fc2), lambda i: (0, 0)),
            pl.BlockSpec((1, fc2), lambda i: (0, 0)),
            pl.BlockSpec((fc2, n_heads), lambda i: (0, 0)),
            pl.BlockSpec((1, n_heads), lambda i: (0, 0)),
        ],
        out_specs=pl.BlockSpec((tb, n_heads), lambda i: (i, 0)),
        compiler_params=pltpu.CompilerParams(
            dimension_semantics=("parallel",)),              # shards batch across TCs on v7x
    )(x, params["w1"], params["b1"], params["w2"], params["b2"], wh, bh)

    V = out[:B, :1]
    A = out[:B, 1:n_heads]
    return V, A


def init_linear(key, fan_in, fan_out):
    """PyTorch-style uniform init, stored transposed as (in, out)."""
    kw, kb = jax.random.split(key)
    bound = 1.0 / math.sqrt(fan_in)
    w = jax.random.uniform(kw, (fan_in, fan_out), jnp.float32, -bound, bound)
    b = jax.random.uniform(kb, (1, fan_out), jnp.float32, -bound, bound)
    return w, b


def make_params(key, input_dim, fc1, fc2, n_actions):
    k1, k2, k3, k4 = jax.random.split(key, 4)
    w1, b1 = init_linear(k1, input_dim, fc1)
    w2, b2 = init_linear(k2, fc1, fc2)
    wv, bv = init_linear(k3, fc2, 1)
    wa, ba = init_linear(k4, fc2, n_actions)
    return dict(w1=w1, b1=b1, w2=w2, b2=b2, wv=wv, bv=bv, wa=wa, ba=ba)


# TODO(synk): optimizer (Adam), MSELoss, and save/load are training/IO utilities,
# not part of the forward pass, and are not translated.

if __name__ == "__main__":
    key = jax.random.PRNGKey(0)
    k_params, k_x = jax.random.split(key)

    # Small shapes consistent with the module (module default fc1=fc2=256):
    # batch=8, input_dims=(16,), fc1=fc2=128 (lane-aligned), n_actions=4.
    B, D_IN, FC1, FC2, N_ACTIONS = 8, 16, 128, 128, 4

    params = make_params(k_params, D_IN, FC1, FC2, N_ACTIONS)
    x = jax.random.normal(k_x, (B, D_IN), jnp.float32)

    V, A = dueling_dqn_forward(x, params)
    V, A = jax.block_until_ready(V), jax.block_until_ready(A)

    # Pure-JAX reference check (f32).
    h1 = jnp.maximum(x @ params["w1"] + params["b1"], 0.0)
    h2 = jnp.maximum(h1 @ params["w2"] + params["b2"], 0.0)
    V_ref = h2 @ params["wv"] + params["bv"]
    A_ref = h2 @ params["wa"] + params["ba"]

    assert V.shape == (B, 1) and A.shape == (B, N_ACTIONS)
    assert jnp.allclose(V, V_ref, atol=1e-5, rtol=1e-5)
    assert jnp.allclose(A, A_ref, atol=1e-5, rtol=1e-5)

    print("KERNEL_OK")
</pallas_src>

<mosaic_0001>
module attributes {stable_mosaic.version = 11 : i64} {
  func.func @dueling_dqn_kernel(%arg0: i32, %arg1: memref<8x16xf32, #tpu.memory_space<vmem>>, %arg2: memref<16x128xf32, #tpu.memory_space<vmem>>, %arg3: memref<1x128xf32, #tpu.memory_space<vmem>>, %arg4: memref<128x128xf32, #tpu.memory_space<vmem>>, %arg5: memref<1x128xf32, #tpu.memory_space<vmem>>, %arg6: memref<128x5xf32, #tpu.memory_space<vmem>>, %arg7: memref<1x5xf32, #tpu.memory_space<vmem>>, %arg8: memref<8x5xf32, #tpu.memory_space<vmem>>) attributes {dimension_semantics = [#tpu.dimension_semantics<parallel>], iteration_bounds = array<i64: 1>, scalar_prefetch = 0 : i64, scratch_operands = 0 : i64, tpu.core_type = #tpu.core_type<tc>, window_params = [{transform_indices = @transform_0, window_bounds = array<i64: 8, 16>}, {pipeline_mode = #tpu.pipeline_mode<synchronous>, transform_indices = @transform_1, window_bounds = array<i64: 16, 128>}, {pipeline_mode = #tpu.pipeline_mode<synchronous>, transform_indices = @transform_2, window_bounds = array<i64: 1, 128>}, {pipeline_mode = #tpu.pipeline_mode<synchronous>, transform_indices = @transform_3, window_bounds = array<i64: 128, 128>}, {pipeline_mode = #tpu.pipeline_mode<synchronous>, transform_indices = @transform_4, window_bounds = array<i64: 1, 128>}, {pipeline_mode = #tpu.pipeline_mode<synchronous>, transform_indices = @transform_5, window_bounds = array<i64: 128, 5>}, {pipeline_mode = #tpu.pipeline_mode<synchronous>, transform_indices = @transform_6, window_bounds = array<i64: 1, 5>}, {transform_indices = @transform_7, window_bounds = array<i64: 8, 5>}]} {
    %c0 = arith.constant 0 : index
    %c0_0 = arith.constant 0 : index
    %0 = vector.load %arg1[%c0, %c0_0] : memref<8x16xf32, #tpu.memory_space<vmem>>, vector<8x16xf32>
    %c0_1 = arith.constant 0 : index
    %c0_2 = arith.constant 0 : index
    %1 = vector.load %arg2[%c0_1, %c0_2] : memref<16x128xf32, #tpu.memory_space<vmem>>, vector<16x128xf32>
    %cst = arith.constant dense<0.000000e+00> : vector<8x128xf32>
    %2 = tpu.matmul %0, %1, %cst {dimension_numbers = #tpu.dot_dimension_numbers<[1], [0], [0], [1], [0, 0, 1, 1], [], []>, precision = #tpu.contract_precision<fp32>} : vector<8x16xf32>, vector<16x128xf32>, vector<8x128xf32> -> vector<8x128xf32>
    %c0_3 = arith.constant 0 : index
    %c0_4 = arith.constant 0 : index
    %3 = vector.load %arg3[%c0_3, %c0_4] : memref<1x128xf32, #tpu.memory_space<vmem>>, vector<1x128xf32>
    %4 = vector.broadcast %3 : vector<1x128xf32> to vector<8x128xf32>
    %5 = arith.addf %2, %4 : vector<8x128xf32>
    %cst_5 = arith.constant 0.000000e+00 : f32
    %6 = vector.broadcast %cst_5 : f32 to vector<8x128xf32>
    %7 = arith.maximumf %5, %6 : vector<8x128xf32>
    %c0_6 = arith.constant 0 : index
    %c0_7 = arith.constant 0 : index
    %8 = vector.load %arg4[%c0_6, %c0_7] : memref<128x128xf32, #tpu.memory_space<vmem>>, vector<128x128xf32>
    %cst_8 = arith.constant dense<0.000000e+00> : vector<8x128xf32>
    %9 = tpu.matmul %7, %8, %cst_8 {dimension_numbers = #tpu.dot_dimension_numbers<[1], [0], [0], [1], [0, 0, 1, 1], [], []>, precision = #tpu.contract_precision<fp32>} : vector<8x128xf32>, vector<128x128xf32>, vector<8x128xf32> -> vector<8x128xf32>
    %c0_9 = arith.constant 0 : index
    %c0_10 = arith.constant 0 : index
    %10 = vector.load %arg5[%c0_9, %c0_10] : memref<1x128xf32, #tpu.memory_space<vmem>>, vector<1x128xf32>
    %11 = vector.broadcast %10 : vector<1x128xf32> to vector<8x128xf32>
    %12 = arith.addf %9, %11 : vector<8x128xf32>
    %cst_11 = arith.constant 0.000000e+00 : f32
    %13 = vector.broadcast %cst_11 : f32 to vector<8x128xf32>
    %14 = arith.maximumf %12, %13 : vector<8x128xf32>
    %c0_12 = arith.constant 0 : index
    %c0_13 = arith.constant 0 : index
    %15 = vector.load %arg6[%c0_12, %c0_13] : memref<128x5xf32, #tpu.memory_space<vmem>>, vector<128x5xf32>
    %cst_14 = arith.constant dense<0.000000e+00> : vector<8x5xf32>
    %16 = tpu.matmul %14, %15, %cst_14 {dimension_numbers = #tpu.dot_dimension_numbers<[1], [0], [0], [1], [0, 0, 1, 1], [], []>, precision = #tpu.contract_precision<fp32>} : vector<8x128xf32>, vector<128x5xf32>, vector<8x5xf32> -> vector<8x5xf32>
    %c0_15 = arith.constant 0 : index
    %c0_16 = arith.constant 0 : index
    %17 = vector.load %arg7[%c0_15, %c0_16] : memref<1x5xf32, #tpu.memory_space<vmem>>, vector<1x5xf32>
    %18 = vector.broadcast %17 : vector<1x5xf32> to vector<8x5xf32>
    %19 = arith.addf %16, %18 : vector<8x5xf32>
    %c0_17 = arith.constant 0 : index
    %c0_18 = arith.constant 0 : index
    %20 = vector.load %arg8[%c0_17, %c0_18] : memref<8x5xf32, #tpu.memory_space<vmem>>, vector<8x5xf32>
    tpu.vector_store %arg8[%c0_17, %c0_18], %19 {strides = array<i32>} : memref<8x5xf32, #tpu.memory_space<vmem>>, vector<8x5xf32>,
    return
  }
  func.func @transform_0(%arg0: i32) -> (i32, i32) {
    %c0_i32 = arith.constant 0 : i32
    %c0_i32_0 = arith.constant 0 : i32
    return %arg0, %c0_i32 : i32, i32
  }
  func.func @transform_1(%arg0: i32) -> (i32, i32) {
    %c0_i32 = arith.constant 0 : i32
    %c0_i32_0 = arith.constant 0 : i32
    %c0_i32_1 = arith.constant 0 : i32
    return %c0_i32, %c0_i32_0 : i32, i32
  }
  func.func @transform_2(%arg0: i32) -> (i32, i32) {
    %c0_i32 = arith.constant 0 : i32
    %c0_i32_0 = arith.constant 0 : i32
    %c0_i32_1 = arith.constant 0 : i32
    return %c0_i32, %c0_i32_0 : i32, i32
  }
  func.func @transform_3(%arg0: i32) -> (i32, i32) {
    %c0_i32 = arith.constant 0 : i32
    %c0_i32_0 = arith.constant 0 : i32
    %c0_i32_1 = arith.constant 0 : i32
    return %c0_i32, %c0_i32_0 : i32, i32
  }
  func.func @transform_4(%arg0: i32) -> (i32, i32) {
    %c0_i32 = arith.constant 0 : i32
    %c0_i32_0 = arith.constant 0 : i32
    %c0_i32_1 = arith.constant 0 : i32
    return %c0_i32, %c0_i32_0 : i32, i32
  }
  func.func @transform_5(%arg0: i32) -> (i32, i32) {
    %c0_i32 = arith.constant 0 : i32
    %c0_i32_0 = arith.constant 0 : i32
    %c0_i32_1 = arith.constant 0 : i32
    return %c0_i32, %c0_i32_0 : i32, i32
  }
  func.func @transform_6(%arg0: i32) -> (i32, i32) {
    %c0_i32 = arith.constant 0 : i32
    %c0_i32_0 = arith.constant 0 : i32
    %c0_i32_1 = arith.constant 0 : i32
    return %c0_i32, %c0_i32_0 : i32, i32
  }
  func.func @transform_7(%arg0: i32) -> (i32, i32) {
    %c0_i32 = arith.constant 0 : i32
    %c0_i32_0 = arith.constant 0 : i32
    return %arg0, %c0_i32 : i32, i32
  }
}

</mosaic_0001>

<bundles_post_ra>
// kernel: tpu_custom_call.1
= control target key start
LH: loop header
LB: loop body
LE: loop exit
PB: predicated region body
PF: predicated region fallthrough
CT: control target
= control target key end

     0   :  { %12 = vsyncpa [#allocation3], 0  ;;  %s1626_s0 = inlined_call_operand.vmem [shape: f32[8,16], index: 0, kind: input, shape index: {}]   ;;  %s1627_s1 = inlined_call_operand.hbm [shape: f32[16,128], index: 1, kind: input, shape index: {}]   ;;  %s1628_s2 = inlined_call_operand.vmem [shape: f32[1,128], index: 2, kind: input, shape index: {}]   ;;  %s1629_s3 = inlined_call_operand.vmem [shape: f32[128,128], index: 3, kind: input, shape index: {}]   ;;  %s1630_s4 = inlined_call_operand.vmem [shape: f32[1,128], index: 4, kind: input, shape index: {}]   ;;  %s1631_s5 = inlined_call_operand.vmem [shape: f32[128,5], index: 5, kind: input, shape index: {}]   ;;  %s1632_s6 = inlined_call_operand.vmem [shape: f32[1,5], index: 6, kind: input, shape index: {}]   ;;  %s1633_s7 = inlined_call_operand.hbm [shape: f32[8,5], index: 7, kind: output, shape index: {}]  }
   0x1   :  { %13 = vsyncpa [#allocation4], 0  ;;  %s20_s26 = sshll.u32 %s1627_s1, 4  ;;  %s1015_s27 = smov [#allocation2]   ;;  %s21_s26 = int_to_ptr.hbm [resolvable:$true] %s20_s26 }
   0x2   :  { %s22_s28 = sshll.u32 %s1015_s27, 4  ;;  %s1016_s29 = smov 128   ;;  %s23_s28 = int_to_ptr.vmem [resolvable:$true] %s22_s28 }
   0x3   :  { %s1017_s30 = smov 8  }
   0x4   :  { %28 = dma.hbm_to_vmem [thread:$0]  %s21_s26, 256, %s23_s28, [#allocation3], %s1016_s29, %s1016_s29, %s1017_s30  }
   0x5   :  { %1011 = dma.done.wait [#allocation3], 256  }
   0x6   :  { %1012 = vsyncadd [#allocation3], 4294967040  ;;  %vm50_vm0 = vcmask 130048   ;;  %v45_v0 = vld [vmem:[#allocation2 + $0x8] sm:$0xff]  ;;  %v44_v1 = vld [vmem:[#allocation2] sm:$0xff]  ;;  %s1018_s22 = smov [#allocation5]  }
   0x7   :  { %v43_v2 = vld [vmem:[%s1626_s0] sm:$0xff]  ;;  %v1065_v3 = vand.u32 4294901760, %v45_v0  ;;  %v1067_v4 = vand.u32 4294901760, %v44_v1  ;;  %v229_v6 = vld [vmem:[%s1629_s3 + $0x78] sm:$0xff]  ;;  %v228_v7 = vld [vmem:[%s1629_s3 + $0x70] sm:$0xff]  ;;  %s944_s23 = sshll.u32 %s1018_s22, 4  ;;  %s945_s23 = int_to_ptr.vmem [resolvable:$true] %s944_s23 }
   0x8   :  { %v52_v5 = vsel %vm50_vm0, %v43_v2, 0  ;;  %v227_v8 = vld [vmem:[%s1629_s3 + $0x68] sm:$0xff]  ;;  %v1080_v10 = vand.u32 4294901760, %v229_v6  ;;  %v1082_v11 = vand.u32 4294901760, %v228_v7  ;;  %v226_v13 = vld [vmem:[%s1629_s3 + $0x60] sm:$0xff]  ;;  %v225_v14 = vld [vmem:[%s1629_s3 + $0x58] sm:$0xff] }
   0x9   :  { %v1078_v9 = vand.u32 4294901760, %v52_v5  ;;  %v1084_v12 = vand.u32 4294901760, %v227_v8  ;;  %v96_v15 = vsub.f32 %v45_v0, %v1065_v3  ;;  %69 = vmatpush.msra.mxu0 %v1065_v3  ;;  %v102_v16 = vsub.f32 %v44_v1, %v1067_v4  ;;  %153 = vmatpush.msra.mxu3 %v1065_v3  ;;  %v224_v27 = vld [vmem:[%s1629_s3 + $0x50] sm:$0xff]  ;;  %v223_v40 = vld [vmem:[%s1629_s3 + $0x48] sm:$0xff]  ;;  %v222_v44 = vld [vmem:[%s1629_s3 + $0x40] sm:$0xff]  ;;  %s946_s26 = sshll.u32 %s1633_s7, 4  ;;  %s947_s26 = int_to_ptr.hbm [resolvable:$true] %s946_s26 }
   0xa   :  { %v1096_v17 = vand.u32 4294901760, %v226_v13  ;;  %v1098_v18 = vand.u32 4294901760, %v225_v14  ;;  %v1102_v20 = vsub.f32 %v229_v6, %v1080_v10  ;;  %v1105_v21 = vsub.f32 %v228_v7, %v1082_v11  ;;  %v221_v45 = vld [vmem:[%s1629_s3 + $0x38] sm:$0xff]  ;;  %v220_v46 = vld [vmem:[%s1629_s3 + $0x30] sm:$0xff]  ;;  %v219_v51 = vld [vmem:[%s1629_s3 + $0x28] sm:$0xff] }
   0xb   :  { %v73_v19 = vsub.f32 %v52_v5, %v1078_v9  ;;  %v1108_v22 = vsub.f32 %v227_v8, %v1084_v12  ;;  %128 = vmatpush.msra.mxu2 %v96_v15  ;;  %71 = vmatpush.msra.mxu0 %v1067_v4  ;;  %v97_v23 = vand.u32 4294901760, %v96_v15  ;;  %v103_v24 = vand.u32 4294901760, %v102_v16  ;;  %v218_v52 = vld [vmem:[%s1629_s3 + $0x20] sm:$0xff]  ;;  %v217_v0 = vld [vmem:[%s1629_s3 + $0x18] sm:$0xff] }
   0xc   :  { %v1112_v25 = vsub.f32 %v226_v13, %v1096_v17  ;;  %v1115_v26 = vsub.f32 %v225_v14, %v1098_v18  ;;  %155 = vmatpush.msra.mxu3 %v1067_v4  ;;  %v277_v29 = vand.u32 4294901760, %v1102_v20  ;;  %v283_v30 = vand.u32 4294901760, %v1105_v21 }
   0xd   :  { %v74_v28 = vand.u32 4294901760, %v73_v19  ;;  %v289_v31 = vand.u32 4294901760, %v1108_v22  ;;  %131 = vmatpush.msra.mxu2 %v102_v16  ;;  %v98_v32 = vsub.f32 %v96_v15, %v97_v23  ;;  %180 = vmatpush.msrb.mxu0 %v97_v23  ;;  %v104_v33 = vsub.f32 %v102_v16, %v103_v24 }
   0xe   :  { %v295_v34 = vand.u32 4294901760, %v1112_v25  ;;  %v301_v35 = vand.u32 4294901760, %v1115_v26  ;;  %134 = vmatmul.f32.vlgmr.msra.gmra.mxu2 %v73_v19  ;;  %v278_v37 = vsub.f32 %v1102_v20, %v277_v29  ;;  %v284_v38 = vsub.f32 %v1105_v21, %v283_v30 }
   0xf   :  { %v75_v36 = vsub.f32 %v73_v19, %v74_v28  ;;  %159 = vmatmul.f32.vlgmr.msra.gmra.mxu3 %v74_v28  ;;  %v1132_v39 = vand.u32 4294901760, %v224_v27  ;;  %v99_v41 = vand.u32 4294901760, %v98_v32  ;;  %v105_v42 = vand.u32 4294901760, %v104_v33  ;;  %184 = vmatpush.msrb.mxu0 %v103_v24 }
  0x10   :  { %v290_v43 = vsub.f32 %v1108_v22, %v289_v31  ;;  %235 = vmatpush.msrb.mxu2 %v1080_v10  ;;  %v279_v48 = vand.u32 4294901760, %v278_v37  ;;  %v285_v49 = vand.u32 4294901760, %v284_v38  ;;  %v296_v50 = vsub.f32 %v1112_v25, %v295_v34 }
  0x11   :  { %v76_v47 = vand.u32 4294901760, %v75_v36  ;;  %100 = vmatpush.msra.mxu1 %v99_v41  ;;  %v302_v53 = vsub.f32 %v1115_v26, %v301_v35  ;;  %v1164_v54 = vsub.f32 %v224_v27, %v1132_v39  ;;  %v1166_v55 = vand.u32 4294901760, %v223_v40  ;;  %v214_v36 = vld [vmem:[%s1629_s3] sm:$0xff] }
  0x12   :  { %237 = vmatpush.msrb.mxu2 %v1082_v11  ;;  %280 = vmatpush.msrb.mxu3 %v279_v48  ;;  %v291_v56 = vand.u32 4294901760, %v290_v43  ;;  %v1168_v57 = vand.u32 4294901760, %v222_v44  ;;  %v1170_v58 = vand.u32 4294901760, %v221_v45  ;;  %v1172_v59 = vand.u32 4294901760, %v220_v46 }
  0x13   :  { %77 = vmatmul.f32.vlgmr.msra.gmra.mxu0 %v76_v47  ;;  %106 = vmatpush.msra.mxu1 %v105_v42  ;;  %v307_v60 = vand.u32 4294901760, %v1164_v54  ;;  %v1177_v61 = vsub.f32 %v223_v40, %v1166_v55  ;;  %v1179_v62 = vand.u32 4294901760, %v219_v51  ;;  %v1181_v63 = vand.u32 4294901760, %v218_v52 }
  0x14   :  { %239 = vmatpush.msrb.mxu2 %v1084_v12  ;;  %108 = vmatmul.f32.vlgmr.msra.gmra.mxu1 %v1078_v9  ;;  %v297_v1 = vand.u32 4294901760, %v296_v50  ;;  %v1188_v2 = vsub.f32 %v222_v44, %v1168_v57  ;;  %v1191_v5 = vsub.f32 %v221_v45, %v1170_v58  ;;  %v1194_v6 = vsub.f32 %v220_v46, %v1172_v59 }
  0x15   :  { %286 = vmatpush.msrb.mxu3 %v285_v49  ;;  %205 = vmatpush.msrb.mxu1 %v1065_v3  ;;  %v303_v7 = vand.u32 4294901760, %v302_v53  ;;  %v308_v8 = vsub.f32 %v1164_v54, %v307_v60  ;;  %v313_v13 = vand.u32 4294901760, %v1177_v61  ;;  %v1205_v16 = vsub.f32 %v219_v51, %v1179_v62  ;;  %v216_v3 = vld [vmem:[%s1629_s3 + $0x10] sm:$0xff] }
  0x16   :  { %241 = vmatpush.msrb.mxu2 %v1096_v17  ;;  %v319_v14 = vand.u32 4294901760, %v1188_v2  ;;  %v325_v15 = vand.u32 4294901760, %v1191_v5  ;;  %v1207_v19 = vand.u32 4294901760, %v217_v0  ;;  %378 = vmatpush.msra.mxu0 %v1102_v20  ;;  %v1219_v24 = vsub.f32 %v218_v52, %v1181_v63  ;;  %v589_v20 = vld [vmem:[%s1631_s5 + $0x68] sm:$0xff] }
  0x17   :  { %292 = vmatpush.msrb.mxu3 %v291_v56  ;;  %207 = vmatpush.msrb.mxu1 %v1067_v4  ;;  %v314_v23 = vsub.f32 %v1177_v61, %v313_v13  ;;  %v309_v27 = vand.u32 4294901760, %v308_v8  ;;  %v331_v32 = vand.u32 4294901760, %v1194_v6  ;;  %v215_v4 = vld [vmem:[%s1629_s3 + $0x8] sm:$0xff]  ;;  %v1230_v33 = vand.u32 4294901760, %v216_v3 }
  0x18   :  { %243 = vmatpush.msrb.mxu2 %v1098_v18  ;;  %v320_v28 = vsub.f32 %v1188_v2, %v319_v14  ;;  %381 = vmatpush.msra.mxu0 %v1105_v21  ;;  %v326_v38 = vsub.f32 %v1191_v5, %v325_v15  ;;  %v337_v40 = vand.u32 4294901760, %v1205_v16  ;;  %v1242_v41 = vsub.f32 %v217_v0, %v1207_v19 }
  0x19   :  { %298 = vmatpush.msrb.mxu3 %v297_v1  ;;  %431 = vmatpush.msra.mxu1 %v1080_v10  ;;  %v315_v37 = vand.u32 4294901760, %v314_v23  ;;  %v343_v42 = vand.u32 4294901760, %v1219_v24  ;;  %v1246_v43 = vand.u32 4294901760, %v215_v4  ;;  %v332_v45 = vsub.f32 %v1194_v6, %v331_v32 }
  0x1a   :  { %245 = vmatpush.msrb.mxu2 %v1132_v39  ;;  %384 = vmatpush.msra.mxu0 %v1108_v22  ;;  %v321_v44 = vand.u32 4294901760, %v320_v28  ;;  %v1254_v46 = vsub.f32 %v216_v3, %v1230_v33  ;;  %v1256_v47 = vand.u32 4294901760, %v214_v36  ;;  %v327_v48 = vand.u32 4294901760, %v326_v38 }
  0x1b   :  { %186 = vmatmul.f32.vlgmr.msrb.gmra.mxu0 %v1078_v9  ;;  %304 = vmatpush.msrb.mxu3 %v303_v7  ;;  %v349_v49 = vand.u32 4294901760, %v1242_v41  ;;  %v1265_v50 = vsub.f32 %v215_v4, %v1246_v43  ;;  %v333_v51 = vand.u32 4294901760, %v332_v45  ;;  %v344_v52 = vsub.f32 %v1219_v24, %v343_v42 }
  0x1c   :  { %247 = vmatpush.msrb.mxu2 %v1166_v55  ;;  %209 = vmatmul.f32.vlgmr.msrb.gmra.mxu1 %v1078_v9  ;;  %v338_v9 = vsub.f32 %v1205_v16, %v337_v40  ;;  %v355_v53 = vand.u32 4294901760, %v1254_v46  ;;  %v1275_v56 = vsub.f32 %v214_v36, %v1256_v47  ;;  %vm937_vm1 = vcmask 39936  }
  0x1d   :  { %310 = vmatpush.msrb.mxu3 %v309_v27  ;;  %433 = vmatpush.msra.mxu1 %v1082_v11  ;;  %v350_v1 = vsub.f32 %v1242_v41, %v349_v49  ;;  %v361_v7 = vand.u32 4294901760, %v1265_v50  ;;  %v345_v8 = vand.u32 4294901760, %v344_v52 }
  0x1e   :  { %249 = vmatpush.msrb.mxu2 %v1168_v57  ;;  %387 = vmatpush.msra.mxu0 %v1112_v25  ;;  %v339_v0 = vand.u32 4294901760, %v338_v9  ;;  %v356_v3 = vsub.f32 %v1254_v46, %v355_v53  ;;  %v367_v23 = vand.u32 4294901760, %v1275_v56 }
  0x1f   :  { %316 = vmatpush.msrb.mxu3 %v315_v37  ;;  %435 = vmatpush.msra.mxu1 %v1084_v12  ;;  %v351_v27 = vand.u32 4294901760, %v350_v1  ;;  %v362_v28 = vsub.f32 %v1265_v50, %v361_v7 }
  0x20   :  { %251 = vmatpush.msrb.mxu2 %v1170_v58  ;;  %390 = vmatpush.msra.mxu0 %v1115_v26  ;;  %v357_v4 = vand.u32 4294901760, %v356_v3  ;;  %v368_v36 = vsub.f32 %v1275_v56, %v367_v23 }
  0x21   :  { %322 = vmatpush.msrb.mxu3 %v321_v44  ;;  %437 = vmatpush.msra.mxu1 %v1096_v17  ;;  %v363_v37 = vand.u32 4294901760, %v362_v28 }
  0x22   :  { %253 = vmatpush.msrb.mxu2 %v1172_v59  ;;  %393 = vmatpush.msra.mxu0 %v1164_v54  ;;  %v369_v38 = vand.u32 4294901760, %v368_v36  ;;  %v579_v36 = vld [vmem:[%s1631_s5 + $0x18] sm:$0xff] }
  0x23   :  { %328 = vmatpush.msrb.mxu3 %v327_v48  ;;  %439 = vmatpush.msra.mxu1 %v1098_v18  ;;  %v582_v48 = vld [vmem:[%s1631_s5 + $0x30] sm:$0xff] }
  0x24   :  { %255 = vmatpush.msrb.mxu2 %v1179_v62  ;;  %396 = vmatpush.msra.mxu0 %v1177_v61  ;;  %v1476_v3 = vand.u32 4294901760, %v582_v48 }
  0x25   :  { %334 = vmatpush.msrb.mxu3 %v333_v51  ;;  %441 = vmatpush.msra.mxu1 %v1132_v39  ;;  %v581_v51 = vld [vmem:[%s1631_s5 + $0x28] sm:$0xff] }
  0x26   :  { %257 = vmatpush.msrb.mxu2 %v1181_v63  ;;  %399 = vmatpush.msra.mxu0 %v1188_v2 }
  0x27   :  { %340 = vmatpush.msrb.mxu3 %v339_v0  ;;  %443 = vmatpush.msra.mxu1 %v1166_v55  ;;  %v580_v0 = vld [vmem:[%s1631_s5 + $0x20] sm:$0xff] }
  0x28   :  { %259 = vmatpush.msrb.mxu2 %v1207_v19  ;;  %402 = vmatpush.msra.mxu0 %v1191_v5 }
  0x29   :  { %346 = vmatpush.msrb.mxu3 %v345_v8  ;;  %445 = vmatpush.msra.mxu1 %v1168_v57 }
  0x2a   :  { %261 = vmatpush.msrb.mxu2 %v1230_v33  ;;  %405 = vmatpush.msra.mxu0 %v1194_v6 }
  0x2b   :  { %352 = vmatpush.msrb.mxu3 %v351_v27  ;;  %447 = vmatpush.msra.mxu1 %v1170_v58 }
  0x2c   :  { %263 = vmatpush.msrb.mxu2 %v1246_v43  ;;  %408 = vmatpush.msra.mxu0 %v1205_v16 }
  0x2d   :  { %358 = vmatpush.msrb.mxu3 %v357_v4  ;;  %449 = vmatpush.msra.mxu1 %v1172_v59  ;;  %v1481_v4 = vand.u32 4294901760, %v581_v51 }
  0x2e   :  { %265 = vmatpush.msrb.mxu2 %v1256_v47  ;;  %411 = vmatpush.msra.mxu0 %v1219_v24 }
  0x2f   :  { %364 = vmatpush.msrb.mxu3 %v363_v37  ;;  %451 = vmatpush.msra.mxu1 %v1179_v62 }
  0x30   :  { %472 = vmatpush.msra.mxu2 %v277_v29  ;;  %414 = vmatpush.msra.mxu0 %v1242_v41  ;;  %v1387_v29 = vand.u32 4294901760, %v589_v20 }
  0x31   :  { %370 = vmatpush.msrb.mxu3 %v369_v38  ;;  %453 = vmatpush.msra.mxu1 %v1181_v63 }
  0x32   :  { %476 = vmatpush.msra.mxu2 %v283_v30  ;;  %417 = vmatpush.msra.mxu0 %v1254_v46  ;;  %v588_v30 = vld [vmem:[%s1631_s5 + $0x60] sm:$0xff]  ;;  %v1414_v61 = vsub.f32 %v589_v20, %v1387_v29 }
  0x33   :  { %539 = vmatpush.msra.mxu3 %v1080_v10  ;;  %455 = vmatpush.msra.mxu1 %v1207_v19  ;;  %v960_v10 = vld [vmem:[%s1628_s2] ss:$0 sm:$0xff] }
  0x34   :  { %480 = vmatpush.msra.mxu2 %v289_v31  ;;  %420 = vmatpush.msra.mxu0 %v1265_v50  ;;  %v587_v31 = vld [vmem:[%s1631_s5 + $0x58] sm:$0xff]  ;;  %v584_v46 = vld [vmem:[%s1631_s5 + $0x40] sm:$0xff] }
  0x35   :  { %541 = vmatpush.msra.mxu3 %v1082_v11  ;;  %457 = vmatpush.msra.mxu1 %v1230_v33  ;;  %v1400_v54 = vand.u32 4294901760, %v587_v31 }
  0x36   :  { %484 = vmatpush.msra.mxu2 %v295_v34  ;;  %423 = vmatpush.msra.mxu0 %v1275_v56  ;;  %v586_v34 = vld [vmem:[%s1631_s5 + $0x50] sm:$0xff] }
  0x37   :  { %543 = vmatpush.msra.mxu3 %v1084_v12  ;;  %459 = vmatpush.msra.mxu1 %v1246_v43  ;;  %v1423_v5 = vsub.f32 %v587_v31, %v1400_v54 }
  0x38   :  { %488 = vmatpush.msra.mxu2 %v301_v35 }
  0x39   :  { %545 = vmatpush.msra.mxu3 %v1096_v17  ;;  %461 = vmatpush.msra.mxu1 %v1256_v47  ;;  %v591_v17 = vld [vmem:[%s1631_s5 + $0x78] sm:$0xff]  ;;  %v663_v24 = vand.u32 4294901760, %v1423_v5 }
  0x3a   :  { %492 = vmatpush.msra.mxu2 %v307_v60  ;;  %v1383_v25 = vand.u32 4294901760, %v591_v17 }
  0x3b   :  { %547 = vmatpush.msra.mxu3 %v1098_v18  ;;  %v590_v18 = vld [vmem:[%s1631_s5 + $0x70] sm:$0xff] }
  0x3c   :  { %496 = vmatpush.msra.mxu2 %v313_v13  ;;  %v1385_v26 = vand.u32 4294901760, %v590_v18  ;;  %597 = vmatpush.msrb.mxu0 %v1383_v25 }
  0x3d   :  { %549 = vmatpush.msra.mxu3 %v1132_v39  ;;  %v1398_v39 = vand.u32 4294901760, %v588_v30 }
  0x3e   :  { %500 = vmatpush.msra.mxu2 %v319_v14  ;;  %v1411_v60 = vsub.f32 %v590_v18, %v1385_v26  ;;  %599 = vmatpush.msrb.mxu0 %v1385_v26 }
  0x3f   :  { %551 = vmatpush.msra.mxu3 %v1166_v55  ;;  %v1402_v55 = vand.u32 4294901760, %v586_v34  ;;  %v1420_v2 = vsub.f32 %v588_v30, %v1398_v39  ;;  %v1507_v30 = vand.u32 4294901760, %v579_v36 }
  0x40   :  { %504 = vmatpush.msra.mxu2 %v325_v15  ;;  %v645_v14 = vand.u32 4294901760, %v1411_v60  ;;  %v651_v15 = vand.u32 4294901760, %v1414_v61  ;;  %601 = vmatpush.msrb.mxu0 %v1387_v29 }
  0x41   :  { %553 = vmatpush.msra.mxu3 %v1168_v57  ;;  %v585_v57 = vld [vmem:[%s1631_s5 + $0x48] sm:$0xff]  ;;  %v1426_v6 = vsub.f32 %v586_v34, %v1402_v55 }
  0x42   :  { %508 = vmatpush.msra.mxu2 %v331_v32  ;;  %v646_v41 = vsub.f32 %v1411_v60, %v645_v14  ;;  %603 = vmatpush.msrb.mxu0 %v1398_v39 }
  0x43   :  { %555 = vmatpush.msra.mxu3 %v1170_v58  ;;  %v669_v45 = vand.u32 4294901760, %v1426_v6 }
  0x44   :  { %512 = vmatpush.msra.mxu2 %v337_v40  ;;  %v647_v50 = vand.u32 4294901760, %v646_v41  ;;  %605 = vmatpush.msrb.mxu0 %v1400_v54  ;;  %v1524_v41 = vsub.f32 %v579_v36, %v1507_v30 }
  0x45   :  { %557 = vmatpush.msra.mxu3 %v1172_v59  ;;  %v1408_v59 = vsub.f32 %v591_v17, %v1383_v25  ;;  %v670_v28 = vsub.f32 %v1426_v6, %v669_v45 }
  0x46   :  { %516 = vmatpush.msra.mxu2 %v343_v42  ;;  %v652_v42 = vsub.f32 %v1414_v61, %v651_v15  ;;  %607 = vmatpush.msrb.mxu0 %v1402_v55 }
  0x47   :  { %559 = vmatpush.msra.mxu3 %v1179_v62  ;;  %v1417_v62 = vand.u32 4294901760, %v585_v57  ;;  %v639_v13 = vand.u32 4294901760, %v1408_v59  ;;  %v671_v34 = vand.u32 4294901760, %v670_v28  ;;  %v577_v28 = vld [vmem:[%s1631_s5 + $0x8] sm:$0xff] }
  0x48   :  { %520 = vmatpush.msra.mxu2 %v349_v49  ;;  %v653_v1 = vand.u32 4294901760, %v652_v42 }
  0x49   :  { %561 = vmatpush.msra.mxu3 %v1181_v63  ;;  %v1435_v32 = vsub.f32 %v585_v57, %v1417_v62  ;;  %v640_v40 = vsub.f32 %v1408_v59, %v639_v13  ;;  %609 = vmatpush.msrb.mxu0 %v1417_v62 }
  0x4a   :  { %524 = vmatpush.msra.mxu2 %v355_v53  ;;  %v664_v53 = vsub.f32 %v1423_v5, %v663_v24 }
  0x4b   :  { %563 = vmatpush.msra.mxu3 %v1207_v19  ;;  %v657_v19 = vand.u32 4294901760, %v1420_v2  ;;  %v641_v49 = vand.u32 4294901760, %v640_v40  ;;  %v675_v56 = vand.u32 4294901760, %v1435_v32 }
  0x4c   :  { %528 = vmatpush.msra.mxu2 %v361_v7  ;;  %v1471_v7 = vand.u32 4294901760, %v584_v46  ;;  %v665_v17 = vand.u32 4294901760, %v664_v53 }
  0x4d   :  { %565 = vmatpush.msra.mxu3 %v1230_v33  ;;  %v658_v44 = vsub.f32 %v1420_v2, %v657_v19  ;;  %642 = vmatpush.msrb.mxu1 %v641_v49  ;;  %v676_v18 = vsub.f32 %v1435_v32, %v675_v56  ;;  %v711_v49 = vand.u32 4294901760, %v1524_v41 }
  0x4e   :  { %532 = vmatpush.msra.mxu2 %v367_v23  ;;  %v1487_v37 = vsub.f32 %v584_v46, %v1471_v7  ;;  %611 = vmatpush.msrb.mxu0 %v1471_v7 }
  0x4f   :  { %567 = vmatpush.msra.mxu3 %v1246_v43  ;;  %v659_v27 = vand.u32 4294901760, %v658_v44  ;;  %648 = vmatpush.msrb.mxu1 %v647_v50  ;;  %v712_v53 = vsub.f32 %v1524_v41, %v711_v49 }
  0x50   :  { %v681_v20 = vand.u32 4294901760, %v1487_v37 }
  0x51   :  { %569 = vmatpush.msra.mxu3 %v1256_v47  ;;  %v583_v47 = vld [vmem:[%s1631_s5 + $0x38] sm:$0xff]  ;;  %654 = vmatpush.msrb.mxu1 %v653_v1  ;;  %v713_v1 = vand.u32 4294901760, %v712_v53 }
  0x52   :  { %v1474_v8 = vand.u32 4294901760, %v583_v47 }
  0x53   :  { %660 = vmatpush.msrb.mxu1 %v659_v27 }
  0x54   :  { %v1490_v38 = vsub.f32 %v583_v47, %v1474_v8  ;;  %613 = vmatpush.msrb.mxu0 %v1474_v8 }
  0x55   :  { %666 = vmatpush.msrb.mxu1 %v665_v17  ;;  %v576_v17 = vld [vmem:[%s1631_s5] sm:$0xff] }
  0x56   :  { %615 = vmatpush.msrb.mxu0 %v1476_v3 }
  0x57   :  { %672 = vmatpush.msrb.mxu1 %v671_v34  ;;  %v626_v34 = vand.u32 4294901760, %v576_v17 }
  0x58   :  { %617 = vmatpush.msrb.mxu0 %v1481_v4 }
  0x90   :  { %v78_v11 = vpop.f32.mrf.mxu0 }
  0x91   :  { %v79_v12 = vadd.f32 %v960_v10, %v78_v11  ;;  %v109_v21 = vpop.f32.mrf.mxu1  ;;  %v135_v22 = vpop.f32.mrf.mxu2  ;;  %v1494_v10 = vsub.f32 %v582_v48, %v1476_v3  ;;  %v1496_v11 = vand.u32 4294901760, %v580_v0 }
  0x92   :  { %v160_v58 = vpop.f32.mrf.mxu3 }
  0x93   :  { %v110_v35 = vadd.f32 %v109_v21, %v79_v12  ;;  %v687_v21 = vand.u32 4294901760, %v1490_v38  ;;  %v693_v57 = vand.u32 4294901760, %v1494_v10  ;;  %619 = vmatpush.msrb.mxu0 %v1496_v11 }
  0x95   :  { %v136_v63 = vadd.f32 %v135_v22, %v110_v35  ;;  %v1505_v22 = vsub.f32 %v581_v51, %v1481_v4  ;;  %v682_v35 = vsub.f32 %v1487_v37, %v681_v20  ;;  %v694_v44 = vsub.f32 %v1494_v10, %v693_v57  ;;  %621 = vmatpush.msrb.mxu0 %v1507_v30 }
  0x97   :  { %v161_v16 = vadd.f32 %v160_v58, %v136_v63  ;;  %v1515_v58 = vsub.f32 %v580_v0, %v1496_v11  ;;  %v699_v40 = vand.u32 4294901760, %v1505_v22  ;;  %v695_v50 = vand.u32 4294901760, %v694_v44 }
  0x98   :  { %v187_v33 = vpop.f32.mrf.mxu0 }
  0x99   :  { %v188_v43 = vadd.f32 %v187_v33, %v161_v16  ;;  %v210_v9 = vpop.f32.mrf.mxu1  ;;  %v677_v16 = vand.u32 4294901760, %v676_v18  ;;  %v688_v33 = vsub.f32 %v1490_v38, %v687_v21  ;;  %v705_v46 = vand.u32 4294901760, %v1515_v58 }
  0x9b   :  { %v211_v52 = vadd.f32 %v210_v9, %v188_v43  ;;  %v683_v43 = vand.u32 4294901760, %v682_v35  ;;  %678 = vmatpush.msrb.mxu1 %v677_v16  ;;  %v689_v48 = vand.u32 4294901760, %v688_v33  ;;  %v700_v9 = vsub.f32 %v1505_v22, %v699_v40 }
  0x9c   :  { %v706_v51 = vsub.f32 %v1515_v58, %v705_v46  ;;  %v728_v16 = vsub.f32 %v576_v17, %v626_v34 }
  0x9d   :  { %v213_v23 = vmax.f32 %v211_v52, 0.0  ;;  %684 = vmatpush.msrb.mxu1 %v683_v43  ;;  %v701_v52 = vand.u32 4294901760, %v700_v9 }
  0x9e   :  { %v707_v0 = vand.u32 4294901760, %v706_v51  ;;  %v729_v43 = vand.u32 4294901760, %v728_v16 }
  0x9f   :  { %v266_v12 = vand.u32 4294901760, %v213_v23  ;;  %690 = vmatpush.msrb.mxu1 %v689_v48 }
  0xa1   :  { %v267_v31 = vsub.f32 %v213_v23, %v266_v12  ;;  %372 = vmatmul.f32.vlgmr.msrb.gmra.mxu3 %v266_v12  ;;  %696 = vmatpush.msrb.mxu1 %v695_v50  ;;  %v578_v23 = vld [vmem:[%s1631_s5 + $0x10] sm:$0xff] }
  0xa2   :  { %793 = vmatpush.msrb.mxu3 %v1383_v25  ;;  %v622_v27 = vand.u32 4294901760, %v578_v23 }
  0xa3   :  { %426 = vmatmul.f32.vlgmr.msra.gmra.mxu0 %v267_v31  ;;  %v268_v63 = vand.u32 4294901760, %v267_v31  ;;  %702 = vmatpush.msrb.mxu1 %v701_v52 }
  0xa4   :  { %795 = vmatpush.msrb.mxu3 %v1385_v26  ;;  %v716_v36 = vsub.f32 %v578_v23, %v622_v27  ;;  %623 = vmatpush.msrb.mxu0 %v622_v27 }
  0xa5   :  { %465 = vmatmul.f32.vlgmr.msra.gmra.mxu1 %v268_v63  ;;  %v269_v42 = vsub.f32 %v267_v31, %v268_v63 }
  0xa6   :  { %797 = vmatpush.msrb.mxu3 %v1387_v29  ;;  %708 = vmatpush.msrb.mxu1 %v707_v0  ;;  %v717_v18 = vand.u32 4294901760, %v716_v36 }
  0xa7   :  { %v270_v47 = vand.u32 4294901760, %v269_v42 }
  0xa8   :  { %799 = vmatpush.msrb.mxu3 %v1398_v39  ;;  %714 = vmatpush.msrb.mxu1 %v713_v1  ;;  %v718_v35 = vsub.f32 %v716_v36, %v717_v18 }
  0xa9   :  { %271 = vmatmul.f32.vlgmr.msrb.gmra.mxu2 %v270_v47  ;;  %571 = vmatmul.f32.vlgmr.msra.gmra.mxu3 %v266_v12  ;;  %v730_v47 = vsub.f32 %v728_v16, %v729_v43 }
  0xaa   :  { %740 = vmatpush.msrb.mxu2 %v1408_v59  ;;  %801 = vmatpush.msrb.mxu3 %v1400_v54  ;;  %v719_v33 = vand.u32 4294901760, %v718_v35 }
  0xab   :  { %v731_v48 = vand.u32 4294901760, %v730_v47 }
  0xac   :  { %743 = vmatpush.msrb.mxu2 %v1411_v60  ;;  %803 = vmatpush.msrb.mxu3 %v1402_v55 }
  0xad   :  { %720 = vmatpush.msrb.mxu1 %v719_v33 }
  0xae   :  { %746 = vmatpush.msrb.mxu2 %v1414_v61  ;;  %805 = vmatpush.msrb.mxu3 %v1417_v62 }
  0xb0   :  { %749 = vmatpush.msrb.mxu2 %v1420_v2  ;;  %807 = vmatpush.msrb.mxu3 %v1471_v7 }
  0xb1   :  { %534 = vmatmul.f32.vlgmr.msra.gmra.mxu2 %v266_v12  ;;  %v624_v12 = vand.u32 4294901760, %v577_v28 }
  0xb2   :  { %752 = vmatpush.msrb.mxu2 %v1423_v5  ;;  %809 = vmatpush.msrb.mxu3 %v1474_v8 }
  0xb3   :  { %v722_v31 = vsub.f32 %v577_v28, %v624_v12  ;;  %625 = vmatpush.msrb.mxu0 %v624_v12 }
  0xb4   :  { %755 = vmatpush.msrb.mxu2 %v1426_v6  ;;  %811 = vmatpush.msrb.mxu3 %v1476_v3 }
  0xb5   :  { %v723_v63 = vand.u32 4294901760, %v722_v31  ;;  %627 = vmatpush.msrb.mxu0 %v626_v34 }
  0xb6   :  { %758 = vmatpush.msrb.mxu2 %v1435_v32  ;;  %813 = vmatpush.msrb.mxu3 %v1481_v4 }
  0xb7   :  { %834 = vmatpush.msra.mxu0 %v639_v13  ;;  %v724_v42 = vsub.f32 %v722_v31, %v723_v63 }
  0xb8   :  { %761 = vmatpush.msrb.mxu2 %v1487_v37  ;;  %815 = vmatpush.msrb.mxu3 %v1496_v11 }
  0xb9   :  { %838 = vmatpush.msra.mxu0 %v645_v14  ;;  %v725_v44 = vand.u32 4294901760, %v724_v42 }
  0xba   :  { %764 = vmatpush.msrb.mxu2 %v1490_v38  ;;  %817 = vmatpush.msrb.mxu3 %v1507_v30 }
  0xbb   :  { %842 = vmatpush.msra.mxu0 %v651_v15  ;;  %726 = vmatpush.msrb.mxu1 %v725_v44 }
  0xbc   :  { %767 = vmatpush.msrb.mxu2 %v1494_v10  ;;  %819 = vmatpush.msrb.mxu3 %v622_v27 }
  0xbd   :  { %846 = vmatpush.msra.mxu0 %v657_v19  ;;  %732 = vmatpush.msrb.mxu1 %v731_v48 }
  0xbe   :  { %770 = vmatpush.msrb.mxu2 %v1505_v22  ;;  %821 = vmatpush.msrb.mxu3 %v624_v12 }
  0xbf   :  { %901 = vmatpush.msra.mxu1 %v1383_v25  ;;  %850 = vmatpush.msra.mxu0 %v663_v24  ;;  %v961_v25 = vld [vmem:[%s1630_s4] ss:$0 sm:$0xff] }
  0xc0   :  { %773 = vmatpush.msrb.mxu2 %v1515_v58  ;;  %823 = vmatpush.msrb.mxu3 %v626_v34 }
  0xc1   :  { %903 = vmatpush.msra.mxu1 %v1385_v26  ;;  %854 = vmatpush.msra.mxu0 %v669_v45  ;;  %v962_v45 = vld [vmem:[%s1632_s6] ss:$0 sm:$0xff] }
  0xc2   :  { %776 = vmatpush.msrb.mxu2 %v1524_v41 }
  0xc3   :  { %905 = vmatpush.msra.mxu1 %v1387_v29  ;;  %858 = vmatpush.msra.mxu0 %v675_v56 }
  0xc4   :  { %779 = vmatpush.msrb.mxu2 %v716_v36 }
  0xc5   :  { %907 = vmatpush.msra.mxu1 %v1398_v39  ;;  %862 = vmatpush.msra.mxu0 %v681_v20 }
  0xc6   :  { %782 = vmatpush.msrb.mxu2 %v722_v31 }
  0xc7   :  { %909 = vmatpush.msra.mxu1 %v1400_v54  ;;  %866 = vmatpush.msra.mxu0 %v687_v21 }
  0xc8   :  { %785 = vmatpush.msrb.mxu2 %v728_v16 }
  0xc9   :  { %911 = vmatpush.msra.mxu1 %v1402_v55  ;;  %870 = vmatpush.msra.mxu0 %v693_v57 }
  0xcb   :  { %913 = vmatpush.msra.mxu1 %v1417_v62  ;;  %874 = vmatpush.msra.mxu0 %v699_v40 }
  0xcd   :  { %915 = vmatpush.msra.mxu1 %v1471_v7  ;;  %878 = vmatpush.msra.mxu0 %v705_v46 }
  0xcf   :  { %917 = vmatpush.msra.mxu1 %v1474_v8  ;;  %882 = vmatpush.msra.mxu0 %v711_v49 }
  0xd1   :  { %919 = vmatpush.msra.mxu1 %v1476_v3  ;;  %886 = vmatpush.msra.mxu0 %v717_v18 }
  0xd3   :  { %921 = vmatpush.msra.mxu1 %v1481_v4  ;;  %890 = vmatpush.msra.mxu0 %v723_v63 }
  0xd5   :  { %923 = vmatpush.msra.mxu1 %v1496_v11  ;;  %894 = vmatpush.msra.mxu0 %v729_v43 }
  0xd7   :  { %925 = vmatpush.msra.mxu1 %v1507_v30 }
  0xd9   :  { %927 = vmatpush.msra.mxu1 %v622_v27 }
  0xdb   :  { %929 = vmatpush.msra.mxu1 %v624_v12 }
  0xdd   :  { %931 = vmatpush.msra.mxu1 %v626_v34 }
 0x120   :  { %v427_v55 = vpop.f32.mrf.mxu0 }
 0x122   :  { %v466_v60 = vpop.f32.mrf.mxu1 }
 0x124   :  { %v373_v26 = vpop.f32.mrf.mxu3 }
 0x12c   :  { %v272_v29 = vpop.f32.mrf.mxu2  ;;  %v572_v5 = vpop.f32.mrf.mxu3 }
 0x12d   :  { %v273_v39 = vadd.f32 %v961_v25, %v272_v29 }
 0x12f   :  { %v374_v54 = vadd.f32 %v373_v26, %v273_v39 }
 0x131   :  { %v428_v59 = vadd.f32 %v427_v55, %v374_v54 }
 0x133   :  { %v467_v61 = vadd.f32 %v466_v60, %v428_v59 }
 0x134   :  { %v535_v62 = vpop.f32.mrf.mxu2 }
 0x135   :  { %v536_v2 = vadd.f32 %v535_v62, %v467_v61 }
 0x137   :  { %v573_v6 = vadd.f32 %v572_v5, %v536_v2 }
 0x139   :  { %v575_v13 = vmax.f32 %v573_v6, 0.0 }
 0x13b   :  { %v628_v14 = vand.u32 4294901760, %v575_v13 }
 0x13d   :  { %v629_v15 = vsub.f32 %v575_v13, %v628_v14  ;;  %734 = vmatmul.f32.vlgmr.msrb.gmra.mxu1 %v628_v14 }
 0x13f   :  { %788 = vmatmul.f32.vlgmr.msrb.gmra.mxu2 %v629_v15  ;;  %v630_v19 = vand.u32 4294901760, %v629_v15 }
 0x141   :  { %827 = vmatmul.f32.vlgmr.msrb.gmra.mxu3 %v630_v19  ;;  %v631_v24 = vsub.f32 %v629_v15, %v630_v19 }
 0x143   :  { %v632_v32 = vand.u32 4294901760, %v631_v24 }
 0x145   :  { %633 = vmatmul.f32.vlgmr.msrb.gmra.mxu0 %v632_v32  ;;  %933 = vmatmul.f32.vlgmr.msra.gmra.mxu1 %v628_v14 }
 0x14d   :  { %896 = vmatmul.f32.vlgmr.msra.gmra.mxu0 %v628_v14 }
 0x1ba   :  { %v735_v56 = vpop.f32.mrf.mxu1 }
 0x1c2   :  { %v634_v7 = vpop.f32.mrf.mxu0  ;;  %v789_v4 = vpop.f32.mrf.mxu2 }
 0x1c3   :  { %v635_v8 = vadd.f32 %v962_v45, %v634_v7  ;;  %v934_v21 = vpop.f32.mrf.mxu1 }
 0x1c4   :  { %v828_v38 = vpop.f32.mrf.mxu3 }
 0x1c5   :  { %v736_v3 = vadd.f32 %v735_v56, %v635_v8 }
 0x1c7   :  { %v790_v37 = vadd.f32 %v789_v4, %v736_v3 }
 0x1c9   :  { %v829_v10 = vadd.f32 %v828_v38, %v790_v37 }
 0x1ca   :  { %v897_v11 = vpop.f32.mrf.mxu0 }
 0x1cb   :  { %v898_v20 = vadd.f32 %v897_v11, %v829_v10 }
 0x1cd   :  { %v935_v22 = vadd.f32 %v934_v21, %v898_v20 }
 0x1cf   :  { %938 = vst.msk [vmem:[#allocation5] sm:$0xff] %vm937_vm1, %v935_v22 }
 0x1d0   :  { %949 = dma.vmem_to_hbm [thread:$0]  %s945_s23, 128, %s947_s26, [#allocation4]  }
 0x1d1   :  { %1013 = dma.done.wait [#allocation4], 128  }
 0x1d2   :  { %1014 = vsyncadd [#allocation4], 4294967168 }
 0x1d3   :  { %954 = vsyncpa [#allocation3], 1 }
 0x1d4   :  { %955 = vsyncpa [#allocation4], 1 }

</bundles_post_ra>
